<compile_context>
chip_gen: v6e
topology: v6e:2x2x1
jax: 0.10.0
libtpu: 0.0.40
codegen_flags: <defaults>
</compile_context>

<pallas_src>
import functools

import jax
import jax.numpy as jnp
from jax.experimental import pallas as pl
from jax.experimental.pallas import tpu as pltpu


def _round_up(n, m):
    return ((n + m - 1) // m) * m


def _gcn_kernel(x_ref, w_ref, adj_ref, b_ref, o_ref):
    """One row-tile of:  out = (x @ W) @ adj + bias.  All refs in VMEM."""
    support = jnp.dot(x_ref[...], w_ref[...],
                      preferred_element_type=jnp.float32)      # [TB, Mp]
    out = jnp.dot(support, adj_ref[...],
                  preferred_element_type=jnp.float32)           # [TB, Pp]
    o_ref[...] = (out + b_ref[...]).astype(o_ref.dtype)


def graph_convolution(x, weight, adj, bias=None, *, row_tile=256):
    """x: [N, in_f], weight: [in_f, out_f], adj: [out_f, P], bias: [P] or None."""
    N, K = x.shape
    Kw, M = weight.shape
    assert K == Kw, (K, Kw)
    Ma, P = adj.shape
    assert Ma == M, (Ma, M)

    if bias is None:
        bias = jnp.zeros((P,), jnp.float32)

    # Lane-dense padding: last dims -> multiples of 128, row tile -> multiple of 8.
    Kp = _round_up(K, 128)
    Mp = _round_up(M, 128)
    Pp = _round_up(P, 128)
    TB = min(row_tile, _round_up(N, 8))
    Np = _round_up(N, TB)

    xp = jnp.zeros((Np, Kp), jnp.float32).at[:N, :K].set(x.astype(jnp.float32))
    wp = jnp.zeros((Kp, Mp), jnp.float32).at[:K, :M].set(weight.astype(jnp.float32))
    ap = jnp.zeros((Mp, Pp), jnp.float32).at[:M, :P].set(adj.astype(jnp.float32))
    bp = jnp.zeros((1, Pp), jnp.float32).at[0, :P].set(bias.astype(jnp.float32))

    grid = (Np // TB,)

    cost = pl.CostEstimate(
        flops=2 * N * K * M + 2 * N * M * P,
        transcendentals=0,
        bytes_accessed=4 * (N * K + K * M + M * P + P + N * P),
    )

    out_padded = pl.pallas_call(
        _gcn_kernel,
        out_shape=jax.ShapeDtypeStruct((Np, Pp), jnp.float32),
        grid=grid,
        in_specs=[
            pl.BlockSpec((TB, Kp), lambda i: (i, 0)),   # x row tile
            pl.BlockSpec((Kp, Mp), lambda i: (0, 0)),   # weight (resident)
            pl.BlockSpec((Mp, Pp), lambda i: (0, 0)),   # adj    (resident)
            pl.BlockSpec((1, Pp), lambda i: (0, 0)),    # bias   (resident)
        ],
        out_specs=pl.BlockSpec((TB, Pp), lambda i: (i, 0)),
        compiler_params=pltpu.CompilerParams(
            dimension_semantics=("parallel",),
        ),
        cost_estimate=cost,
    )(xp, wp, ap, bp)

    return out_padded[:N, :P]


# jitted entry point (row_tile is baked in; shapes are static at trace time)
gcn = jax.jit(functools.partial(graph_convolution, row_tile=256))


def reference_forward(x, weight, adj, bias):
    return (x @ weight) @ adj + bias


if __name__ == "__main__":
    # Small config consistent with the module: 16 rows, in_features=32,
    # out_features=64; adj is [out_features, out_features] (as the literal
    # forward `spmm(support, adj)` + bias broadcast requires).
    n_rows, in_features, out_features = 16, 32, 64

    key = jax.random.PRNGKey(0)
    kx, kw, kb, ka = jax.random.split(key, 4)

    stdv = 1.0 / (out_features ** 0.5)   # PyTorch: 1/sqrt(weight.size(1))
    weight = jax.random.uniform(kw, (in_features, out_features), jnp.float32,
                                -stdv, stdv)
    bias = jax.random.uniform(kb, (out_features,), jnp.float32, -stdv, stdv)
    x = jax.random.normal(kx, (n_rows, in_features), jnp.float32)
    adj = jax.random.uniform(ka, (out_features, out_features), jnp.float32)

    out = gcn(x, weight, adj, bias)
    out = jax.block_until_ready(out)

    ref = reference_forward(x, weight, adj, bias)
    assert out.shape == ref.shape, (out.shape, ref.shape)
    assert jnp.allclose(out, ref, atol=1e-4, rtol=1e-4), \
        float(jnp.max(jnp.abs(out - ref)))

    print("KERNEL_OK")
</pallas_src>

<mosaic_0001>
module attributes {stable_mosaic.version = 11 : i64} {
  func.func @_gcn_kernel(%arg0: i32, %arg1: memref<16x128xf32, #tpu.memory_space<vmem>>, %arg2: memref<128x128xf32, #tpu.memory_space<vmem>>, %arg3: memref<128x128xf32, #tpu.memory_space<vmem>>, %arg4: memref<1x128xf32, #tpu.memory_space<vmem>>, %arg5: memref<16x128xf32, #tpu.memory_space<vmem>>) attributes {dimension_semantics = [#tpu.dimension_semantics<parallel>], iteration_bounds = array<i64: 1>, scalar_prefetch = 0 : i64, scratch_operands = 0 : i64, tpu.core_type = #tpu.core_type<tc>, window_params = [{transform_indices = @transform_0, window_bounds = array<i64: 16, 128>}, {pipeline_mode = #tpu.pipeline_mode<synchronous>, transform_indices = @transform_1, window_bounds = array<i64: 128, 128>}, {pipeline_mode = #tpu.pipeline_mode<synchronous>, transform_indices = @transform_2, window_bounds = array<i64: 128, 128>}, {pipeline_mode = #tpu.pipeline_mode<synchronous>, transform_indices = @transform_3, window_bounds = array<i64: 1, 128>}, {transform_indices = @transform_4, window_bounds = array<i64: 16, 128>}]} {
    %c0 = arith.constant 0 : index
    %c0_0 = arith.constant 0 : index
    %0 = vector.load %arg1[%c0, %c0_0] : memref<16x128xf32, #tpu.memory_space<vmem>>, vector<16x128xf32>
    %c0_1 = arith.constant 0 : index
    %c0_2 = arith.constant 0 : index
    %1 = vector.load %arg2[%c0_1, %c0_2] : memref<128x128xf32, #tpu.memory_space<vmem>>, vector<128x128xf32>
    %cst = arith.constant dense<0.000000e+00> : vector<16x128xf32>
    %2 = tpu.matmul %0, %1, %cst {dimension_numbers = #tpu.dot_dimension_numbers<[1], [0], [0], [1], [0, 0, 1, 1], [], []>} : vector<16x128xf32>, vector<128x128xf32>, vector<16x128xf32> -> vector<16x128xf32>
    %c0_3 = arith.constant 0 : index
    %c0_4 = arith.constant 0 : index
    %3 = vector.load %arg3[%c0_3, %c0_4] : memref<128x128xf32, #tpu.memory_space<vmem>>, vector<128x128xf32>
    %cst_5 = arith.constant dense<0.000000e+00> : vector<16x128xf32>
    %4 = tpu.matmul %2, %3, %cst_5 {dimension_numbers = #tpu.dot_dimension_numbers<[1], [0], [0], [1], [0, 0, 1, 1], [], []>} : vector<16x128xf32>, vector<128x128xf32>, vector<16x128xf32> -> vector<16x128xf32>
    %c0_6 = arith.constant 0 : index
    %c0_7 = arith.constant 0 : index
    %5 = vector.load %arg4[%c0_6, %c0_7] : memref<1x128xf32, #tpu.memory_space<vmem>>, vector<1x128xf32>
    %6 = vector.broadcast %5 : vector<1x128xf32> to vector<16x128xf32>
    %7 = arith.addf %4, %6 : vector<16x128xf32>
    %c0_8 = arith.constant 0 : index
    %c0_9 = arith.constant 0 : index
    %8 = vector.load %arg5[%c0_8, %c0_9] : memref<16x128xf32, #tpu.memory_space<vmem>>, vector<16x128xf32>
    tpu.vector_store %arg5[%c0_8, %c0_9], %7 {strides = array<i32>} : memref<16x128xf32, #tpu.memory_space<vmem>>, vector<16x128xf32>,
    return
  }
  func.func @transform_0(%arg0: i32) -> (i32, i32) {
    %c0_i32 = arith.constant 0 : i32
    %c0_i32_0 = arith.constant 0 : i32
    return %arg0, %c0_i32 : i32, i32
  }
  func.func @transform_1(%arg0: i32) -> (i32, i32) {
    %c0_i32 = arith.constant 0 : i32
    %c0_i32_0 = arith.constant 0 : i32
    %c0_i32_1 = arith.constant 0 : i32
    return %c0_i32, %c0_i32_0 : i32, i32
  }
  func.func @transform_2(%arg0: i32) -> (i32, i32) {
    %c0_i32 = arith.constant 0 : i32
    %c0_i32_0 = arith.constant 0 : i32
    %c0_i32_1 = arith.constant 0 : i32
    return %c0_i32, %c0_i32_0 : i32, i32
  }
  func.func @transform_3(%arg0: i32) -> (i32, i32) {
    %c0_i32 = arith.constant 0 : i32
    %c0_i32_0 = arith.constant 0 : i32
    %c0_i32_1 = arith.constant 0 : i32
    return %c0_i32, %c0_i32_0 : i32, i32
  }
  func.func @transform_4(%arg0: i32) -> (i32, i32) {
    %c0_i32 = arith.constant 0 : i32
    %c0_i32_0 = arith.constant 0 : i32
    return %arg0, %c0_i32 : i32, i32
  }
}

</mosaic_0001>

<bundles_post_ra>
// kernel: graph_convolution.1
= control target key start
LH: loop header
LB: loop body
LE: loop exit
PB: predicated region body
PF: predicated region fallthrough
CT: control target
= control target key end

     0   :  { %s495_s0 = inlined_call_operand.vmem [shape: f32[16,128], index: 0, kind: input, shape index: {}]   ;;  %s496_s1 = inlined_call_operand.vmem [shape: f32[128,128], index: 1, kind: input, shape index: {}]   ;;  %s497_s2 = inlined_call_operand.vmem [shape: f32[128,128], index: 2, kind: input, shape index: {}]   ;;  %s498_s3 = inlined_call_operand.vmem [shape: f32[1,128], index: 3, kind: input, shape index: {}]   ;;  %s499_s4 = inlined_call_operand.hbm [shape: f32[16,128], index: 4, kind: output, shape index: {}]  }
   0x1   :  { %v35_v0 = vld [vmem:[%s496_s1 + $0x78] sm:$0xff]  ;;  %v34_v1 = vld [vmem:[%s496_s1 + $0x70] sm:$0xff]  ;;  %v33_v2 = vld [vmem:[%s496_s1 + $0x68] sm:$0xff] }
   0x2   :  { %264 = vmatprep.subr.mxu0 %v35_v0  ;;  %v32_v3 = vld [vmem:[%s496_s1 + $0x60] sm:$0xff]  ;;  %v31_v5 = vld [vmem:[%s496_s1 + $0x58] sm:$0xff]  ;;  %v125_v7 = vld [vmem:[%s497_s2 + $0x70] sm:$0xff] }
   0x3   :  { %265 = vmatpush3.msra.mxu0 %v35_v0  ;;  %v18_v4 = vld [vmem:[%s495_s0] sm:$0xff]  ;;  %v126_v6 = vld [vmem:[%s497_s2 + $0x78] sm:$0xff]  ;;  %v30_v8 = vld [vmem:[%s496_s1 + $0x50] sm:$0xff] }
   0x4   :  { %266 = vmatprep.subr.mxu0 %v34_v1  ;;  %296 = vmatprep.mubr.f32.mxu0 %v18_v4  ;;  %v124_v9 = vld [vmem:[%s497_s2 + $0x68] sm:$0xff]  ;;  %v123_v11 = vld [vmem:[%s497_s2 + $0x60] sm:$0xff] }
   0x5   :  { %267 = vmatpush3.msra.mxu0 %v34_v1  ;;  %299 = vmatprep.subr.mxu1 %v126_v6  ;;  %v29_v10 = vld [vmem:[%s496_s1 + $0x48] sm:$0xff] }
   0x6   :  { %268 = vmatprep.subr.mxu0 %v33_v2  ;;  %300 = vmatpush3.msra.mxu1 %v126_v6 }
   0x7   :  { %269 = vmatpush3.msra.mxu0 %v33_v2  ;;  %301 = vmatprep.subr.mxu1 %v125_v7 }
   0x8   :  { %270 = vmatprep.subr.mxu0 %v32_v3  ;;  %302 = vmatpush3.msra.mxu1 %v125_v7 }
   0x9   :  { %271 = vmatpush3.msra.mxu0 %v32_v3 }
   0xa   :  { %272 = vmatprep.subr.mxu0 %v31_v5 }
   0xb   :  { %273 = vmatpush3.msra.mxu0 %v31_v5 }
   0xc   :  { %9 = vsyncpa [#allocation3], 0  ;;  %274 = vmatprep.subr.mxu0 %v30_v8  ;;  %303 = vmatprep.subr.mxu1 %v124_v9  ;;  %v28_v12 = vld [vmem:[%s496_s1 + $0x40] sm:$0xff]  ;;  %v122_v13 = vld [vmem:[%s497_s2 + $0x58] sm:$0xff]  ;;  %s359_s5 = smov [#allocation2]  }
   0xd   :  { %275 = vmatpush3.msra.mxu0 %v30_v8  ;;  %304 = vmatpush3.msra.mxu1 %v124_v9  ;;  %v27_v14 = vld [vmem:[%s496_s1 + $0x38] sm:$0xff]  ;;  %v121_v15 = vld [vmem:[%s497_s2 + $0x50] sm:$0xff]  ;;  %v120_v17 = vld [vmem:[%s497_s2 + $0x48] sm:$0xff]  ;;  %s216_s6 = sshll.u32 %s359_s5, 4  ;;  %s217_s6 = int_to_ptr.vmem [resolvable:$true] %s216_s6 }
   0xe   :  { %276 = vmatprep.subr.mxu0 %v29_v10  ;;  %305 = vmatprep.subr.mxu1 %v123_v11  ;;  %v26_v16 = vld [vmem:[%s496_s1 + $0x30] sm:$0xff]  ;;  %v25_v18 = vld [vmem:[%s496_s1 + $0x28] sm:$0xff]  ;;  %v119_v19 = vld [vmem:[%s497_s2 + $0x40] sm:$0xff]  ;;  %p342_p1 = scmp.lt.s32.totalorder %s217_s6, %s217_s6 }
   0xf   :  { %277 = vmatpush3.msra.mxu0 %v29_v10  ;;  %306 = vmatpush3.msra.mxu1 %v123_v11  ;;  %v24_v20 = vld [vmem:[%s496_s1 + $0x20] sm:$0xff]  ;;  %v118_v21 = vld [vmem:[%s497_s2 + $0x38] sm:$0xff]  ;;  %v117_v23 = vld [vmem:[%s497_s2 + $0x30] sm:$0xff] }
  0x10   :  { %278 = vmatprep.subr.mxu0 %v28_v12  ;;  %307 = vmatprep.subr.mxu1 %v122_v13  ;;  %v23_v22 = vld [vmem:[%s496_s1 + $0x18] sm:$0xff]  ;;  %v22_v24 = vld [vmem:[%s496_s1 + $0x10] sm:$0xff]  ;;  %v116_v25 = vld [vmem:[%s497_s2 + $0x28] sm:$0xff] }
  0x11   :  { %279 = vmatpush3.msra.mxu0 %v28_v12  ;;  %308 = vmatpush3.msra.mxu1 %v122_v13  ;;  %v21_v26 = vld [vmem:[%s496_s1 + $0x8] sm:$0xff]  ;;  %v115_v27 = vld [vmem:[%s497_s2 + $0x20] sm:$0xff]  ;;  %v114_v29 = vld [vmem:[%s497_s2 + $0x18] sm:$0xff] }
  0x12   :  { %280 = vmatprep.subr.mxu0 %v27_v14  ;;  %309 = vmatprep.subr.mxu1 %v121_v15  ;;  %v20_v28 = vld [vmem:[%s496_s1] sm:$0xff]  ;;  %v19_v30 = vld [vmem:[%s495_s0 + $0x8] sm:$0xff]  ;;  %v113_v31 = vld [vmem:[%s497_s2 + $0x10] sm:$0xff] }
  0x13   :  { %281 = vmatpush3.msra.mxu0 %v27_v14  ;;  %310 = vmatpush3.msra.mxu1 %v121_v15  ;;  %v112_v32 = vld [vmem:[%s497_s2 + $0x8] sm:$0xff]  ;;  %v111_v33 = vld [vmem:[%s497_s2] sm:$0xff]  ;;  %s337_s2 = scalar_lea.vmem %s217_s6, 256 }
  0x14   :  { %282 = vmatprep.subr.mxu0 %v26_v16  ;;  %311 = vmatprep.subr.mxu1 %v120_v17  ;;  %v227_v36 = vld [vmem:[%s498_s3] ss:$0 sm:$0xff]  ;;  %p338_p0 = scmp.ne.s32.totalorder %s217_s6, %s337_s2  ;;  %p343_p2 = scmp.lt.s32.totalorder %s337_s2, %s337_s2 }
  0x15   :  { %283 = vmatpush3.msra.mxu0 %v26_v16  ;;  %312 = vmatpush3.msra.mxu1 %v120_v17 }
  0x16   :  { %284 = vmatprep.subr.mxu0 %v25_v18  ;;  %313 = vmatprep.subr.mxu1 %v119_v19  ;;  %p344_p3 = por %p343_p2, %p342_p1 }
  0x17   :  { %285 = vmatpush3.msra.mxu0 %v25_v18  ;;  %314 = vmatpush3.msra.mxu1 %v119_v19 }
  0x18   :  { %286 = vmatprep.subr.mxu0 %v24_v20  ;;  %315 = vmatprep.subr.mxu1 %v118_v21  ;;  %p345_p4 = pnand %p344_p3, %p338_p0 }
  0x19   :  { %287 = vmatpush3.msra.mxu0 %v24_v20  ;;  %316 = vmatpush3.msra.mxu1 %v118_v21 }
  0x1a   :  { %288 = vmatprep.subr.mxu0 %v23_v22  ;;  %317 = vmatprep.subr.mxu1 %v117_v23 }
  0x1b   :  { %289 = vmatpush3.msra.mxu0 %v23_v22  ;;  %318 = vmatpush3.msra.mxu1 %v117_v23 }
  0x1c   :  { %290 = vmatprep.subr.mxu0 %v22_v24  ;;  %319 = vmatprep.subr.mxu1 %v116_v25 }
  0x1d   :  { %291 = vmatpush3.msra.mxu0 %v22_v24  ;;  %320 = vmatpush3.msra.mxu1 %v116_v25 }
  0x1e   :  { %292 = vmatprep.subr.mxu0 %v21_v26  ;;  %321 = vmatprep.subr.mxu1 %v115_v27 }
  0x1f   :  { %293 = vmatpush3.msra.mxu0 %v21_v26  ;;  %322 = vmatpush3.msra.mxu1 %v115_v27 }
  0x20   :  { %294 = vmatprep.subr.mxu0 %v20_v28  ;;  %323 = vmatprep.subr.mxu1 %v114_v29 }
  0x21   :  { %295 = vmatpush3.msra.mxu0 %v20_v28  ;;  %324 = vmatpush3.msra.mxu1 %v114_v29 }
  0x22   :  { %297 = vmatmul.mubr.f32.vlgmr.msra.gmra.mxu0 %v19_v30  ;;  %325 = vmatprep.subr.mxu1 %v113_v31 }
  0x23   :  { %326 = vmatpush3.msra.mxu1 %v113_v31 }
  0x24   :  { %327 = vmatprep.subr.mxu1 %v112_v32 }
  0x25   :  { %328 = vmatpush3.msra.mxu1 %v112_v32 }
  0x26   :  { %329 = vmatprep.subr.mxu1 %v111_v33 }
  0x27   :  { %330 = vmatpush3.msra.mxu1 %v111_v33 }
  0xe2   :  { %v298_v34 = vpop.f32.mrf.mxu0 }
  0xe4   :  { %v102_v35 = vpop.f32.mrf.mxu0 }
  0xe5   :  { %331 = vmatprep.mubr.f32.mxu1 %v102_v35 }
  0xe6   :  { %332 = vmatmul.mubr.f32.vlgmr.msra.gmra.mxu1 %v298_v34 }
 0x1a6   :  { %v333_v37 = vpop.f32.mrf.mxu1 }
 0x1a7   :  { %v206_v38 = vadd.f32 %v333_v37, %v227_v36 }
 0x1a8   :  { %v200_v39 = vpop.f32.mrf.mxu1 }
 0x1a9   :  { %210 = vst [vmem:[#allocation2 + $0x8] sm:$0xff] %v206_v38  ;;  %v201_v40 = vadd.f32 %v227_v36, %v200_v39 }
 0x1ab   :  { %209 = vst [vmem:[#allocation2] sm:$0xff] %v201_v40 }
 0x1ac   :  { %348 = shalt.err (!%p345_p4)
}
 0x1ad   :  { %s360_s7 = smov 128   ;;  %s361_s8 = smov 8  }
 0x1ae   :  { %222 = dma.vmem_to_hbm [thread:$0]  %s217_s6, 256, %s499_s4, [#allocation3], %s360_s7, %s360_s7, %s361_s8  }
 0x1af   :  { %357 = dma.done.wait [#allocation3], 256  }
 0x1b0   :  { %358 = vsyncadd [#allocation3], 4294967040 }
 0x1b1   :  { %226 = vsyncpa [#allocation3], 1 }

</bundles_post_ra>
